<compile_context>
chip_gen: v7x
topology: tpu7x:2x2x1
jax: 0.10.0
libtpu: 0.0.40
codegen_flags: <defaults>
</compile_context>

<pallas_src>
import functools

import jax
import jax.numpy as jnp
from jax.experimental import pallas as pl
from jax.experimental.pallas import tpu as pltpu

_LANE = 128
_SUB = 8


def _vmem_budget_and_limit():
    """Generation-aware VMEM numbers: (tiling budget, compiler vmem_limit_bytes)."""
    try:
        cap = int(getattr(pltpu.get_tpu_info(), "vmem_capacity_bytes", 0)) or (64 << 20)
    except Exception:  # conservative fallback
        cap = 64 << 20
    budget = min(cap // 4, 32 << 20)        # v5e/v6e (128 MiB) -> 32 MiB, v7x (64 MiB) -> 16 MiB
    limit = min((cap * 3) // 4, 96 << 20)   # headroom under physical VMEM
    return budget, int(limit)


def _per_col_bytes(n, itemsize):
    # double-buffered x input + y output (4 * itemsize) plus two f32 [N] temporaries per feature
    return n * (4 * itemsize + 2 * 4)


def _choose_tile_c(n, c, itemsize, budget):
    """Feature-tile width: a multiple of 128 (lane-dense), or c itself for one full-width block."""
    per_col = _per_col_bytes(n, itemsize)
    max_by_vmem = max(_LANE, (budget // max(per_col, 1)) // _LANE * _LANE)
    c_pad = pl.cdiv(c, _LANE) * _LANE
    # Prefer >= 2 feature tiles so both v7x TensorCores get work (harmless on 1-TC chips).
    two_tile_cap = pl.cdiv(c_pad // 2, _LANE) * _LANE if c_pad >= 2 * _LANE else c_pad
    tile = min(c_pad, max_by_vmem, two_tile_cap)
    return c if tile >= c else tile


def _bn1d_fused_kernel(x_ref, p_ref, out_ref, stats_ref, *, eps, momentum):
    """Whole batch resident: stats + normalize + running-stat update in one pass over x."""
    xf = x_ref[...].astype(jnp.float32)                       # [N, TILE_C]
    n = xf.shape[0]

    # two-pass centered statistics (block is VMEM resident; avoids sumsq cancellation)
    mean = jnp.sum(xf, axis=0, keepdims=True) * jnp.float32(1.0 / n)          # [1, TILE_C]
    diff = xf - mean
    var = jnp.sum(diff * diff, axis=0, keepdims=True) * jnp.float32(1.0 / (n - 1))

    p = p_ref[...]                                            # [4, TILE_C] f32: w, b, rm, rv
    w, b, rm, rv = p[0:1, :], p[1:2, :], p[2:3, :], p[3:4, :]

    inv_std = jax.lax.rsqrt(var + jnp.float32(eps))
    scale = w * inv_std
    shift = b - mean * scale
    # f32 math, cast at the store (safe on v5e which has no bf16 VPU; kernel is HBM-bound)
    out_ref[...] = (xf * scale + shift).astype(out_ref.dtype)

    stats_ref[0:1, :] = rm * (1.0 - momentum) + mean * momentum
    stats_ref[1:2, :] = rv * (1.0 - momentum) + var * momentum


def _bn1d_stats_kernel(x_ref, p_ref, ss_ref, stats_ref, sum_ref, sq_ref,
                       *, eps, momentum, n, tile_n):
    """N-tiled reduction: accumulate sum/sumsq, emit scale/shift + updated running stats."""
    i = pl.program_id(1)

    @pl.when(i == 0)
    def _():
        sum_ref[...] = jnp.zeros_like(sum_ref)
        sq_ref[...] = jnp.zeros_like(sq_ref)

    xf = x_ref[...].astype(jnp.float32)                       # [TILE_N, TILE_C]
    if n % tile_n:
        # mask the padded rows of the ragged last batch tile so they don't pollute the sums
        row = jax.lax.broadcasted_iota(jnp.int32, xf.shape, 0)
        xf = jnp.where(row < (n - i * tile_n), xf, 0.0)
    sum_ref[...] += jnp.sum(xf, axis=0, keepdims=True)
    sq_ref[...] += jnp.sum(xf * xf, axis=0, keepdims=True)

    @pl.when(i == pl.num_programs(1) - 1)
    def _():
        mean = sum_ref[...] * jnp.float32(1.0 / n)
        var = jnp.maximum(
            (sq_ref[...] - sum_ref[...] * mean) * jnp.float32(1.0 / (n - 1)), 0.0)
        p = p_ref[...]                                        # [4, TILE_C] f32
        w, b, rm, rv = p[0:1, :], p[1:2, :], p[2:3, :], p[3:4, :]
        inv_std = jax.lax.rsqrt(var + jnp.float32(eps))
        scale = w * inv_std
        ss_ref[0:1, :] = scale
        ss_ref[1:2, :] = b - mean * scale
        stats_ref[0:1, :] = rm * (1.0 - momentum) + mean * momentum
        stats_ref[1:2, :] = rv * (1.0 - momentum) + var * momentum


def _bn1d_apply_kernel(x_ref, ss_ref, out_ref):
    """Second pass for the large-N path: y = x * scale + shift."""
    ss = ss_ref[...]                                          # [2, TILE_C] f32
    out_ref[...] = (x_ref[...].astype(jnp.float32) * ss[0:1, :] + ss[1:2, :]
                    ).astype(out_ref.dtype)


def batchnorm1d_train(x, weight, bias, running_mean, running_var, *,
                      eps=1e-5, momentum=0.1, vmem_budget_bytes=None):
    """x: [N, C]; weight/bias/running_*: [C]. Returns (y, new_running_mean, new_running_var)."""
    n, c = x.shape
    assert n >= 2, "training-mode BatchNorm1d needs N >= 2 (unbiased variance divides by N-1)"

    auto_budget, vmem_limit = _vmem_budget_and_limit()
    budget = auto_budget if vmem_budget_bytes is None else int(vmem_budget_bytes)
    itemsize = jnp.dtype(x.dtype).itemsize

    # one stacked (4, C) per-feature input: [weight, bias, running_mean, running_var]
    params = jnp.stack([weight, bias, running_mean, running_var]).astype(jnp.float32)

    whole_batch_fits = _per_col_bytes(n, itemsize) * min(c, _LANE) <= budget

    if whole_batch_fits:
        # --- fused single pass over x: grid over feature tiles only ---------------------------
        tile_c = _choose_tile_c(n, c, itemsize, budget)
        y, new_stats = pl.pallas_call(
            functools.partial(_bn1d_fused_kernel, eps=eps, momentum=momentum),
            grid=(pl.cdiv(c, tile_c),),
            in_specs=[pl.BlockSpec((n, tile_c), lambda j: (0, j)),
                      pl.BlockSpec((4, tile_c), lambda j: (0, j))],
            out_specs=[pl.BlockSpec((n, tile_c), lambda j: (0, j)),
                       pl.BlockSpec((2, tile_c), lambda j: (0, j))],
            out_shape=[jax.ShapeDtypeStruct((n, c), x.dtype),
                       jax.ShapeDtypeStruct((2, c), jnp.float32)],
            compiler_params=pltpu.CompilerParams(
                dimension_semantics=("parallel",),
                vmem_limit_bytes=vmem_limit),
        )(x, params)
    else:
        # --- large-N fallback (v7x 64 MiB VMEM): N-tiled stats pass + N×C-tiled normalize -----
        # TODO(synk): for tiny-C / huge-N on v7x, also shard the N reduction across the two
        #             TensorCores (per-core partial sums + combine) instead of only tiling C.
        c_pad = pl.cdiv(c, _LANE) * _LANE
        tile_c = min(4 * _LANE, c_pad)
        if tile_c >= c:
            tile_c = c
        per_elem = 4 * itemsize + 2 * 4
        tile_n = max(_SUB, (budget // (per_elem * tile_c)) // _SUB * _SUB)
        if tile_n >= n:
            tile_n = n

        scale_shift, new_stats = pl.pallas_call(
            functools.partial(_bn1d_stats_kernel, eps=eps, momentum=momentum,
                              n=n, tile_n=tile_n),
            grid=(pl.cdiv(c, tile_c), pl.cdiv(n, tile_n)),
            in_specs=[pl.BlockSpec((tile_n, tile_c), lambda j, i: (i, j)),
                      pl.BlockSpec((4, tile_c), lambda j, i: (0, j))],
            out_specs=[pl.BlockSpec((2, tile_c), lambda j, i: (0, j)),
                       pl.BlockSpec((2, tile_c), lambda j, i: (0, j))],
            out_shape=[jax.ShapeDtypeStruct((2, c), jnp.float32),
                       jax.ShapeDtypeStruct((2, c), jnp.float32)],
            scratch_shapes=[pltpu.VMEM((1, tile_c), jnp.float32),
                            pltpu.VMEM((1, tile_c), jnp.float32)],
            compiler_params=pltpu.CompilerParams(
                dimension_semantics=("parallel", "arbitrary"),
                vmem_limit_bytes=vmem_limit),
        )(x, params)

        y = pl.pallas_call(
            _bn1d_apply_kernel,
            grid=(pl.cdiv(n, tile_n), pl.cdiv(c, tile_c)),
            in_specs=[pl.BlockSpec((tile_n, tile_c), lambda i, j: (i, j)),
                      pl.BlockSpec((2, tile_c), lambda i, j: (0, j))],
            out_specs=pl.BlockSpec((tile_n, tile_c), lambda i, j: (i, j)),
            out_shape=jax.ShapeDtypeStruct((n, c), x.dtype),
            compiler_params=pltpu.CompilerParams(
                dimension_semantics=("parallel", "parallel"),
                vmem_limit_bytes=vmem_limit),
        )(x, scale_shift)

    new_rm = new_stats[0].astype(running_mean.dtype)
    new_rv = new_stats[1].astype(running_var.dtype)
    return y, new_rm, new_rv


if __name__ == "__main__":
    root = jax.random.PRNGKey(0)
    k0, k1, k2, k3 = jax.random.split(root, 4)

    def check(x, w, b, rm, rv, y, nrm, nrv, tol):
        mean_ref = x.mean(axis=0)
        var_ref = x.var(axis=0, ddof=1)          # unbiased, like torch.var / the module
        y_ref = w * (x - mean_ref) / jnp.sqrt(var_ref + 1e-5) + b
        assert jnp.allclose(y, y_ref, atol=tol, rtol=tol)
        assert jnp.allclose(nrm, 0.9 * rm + 0.1 * mean_ref, atol=tol, rtol=tol)
        assert jnp.allclose(nrv, 0.9 * rv + 0.1 * var_ref, atol=tol, rtol=tol)

    # --- small MLP-style case (module's intended use; fused whole-batch path) -----------------
    N, C = 8, 32
    x = jax.random.normal(k0, (N, C), dtype=jnp.float32)
    weight = jnp.ones((C,), jnp.float32)         # init.ones_
    bias = jnp.zeros((C,), jnp.float32)          # init.zeros_
    running_mean = jnp.zeros((C,), jnp.float32)
    running_var = jnp.ones((C,), jnp.float32)
    y, new_rm, new_rv = batchnorm1d_train(x, weight, bias, running_mean, running_var)
    jax.block_until_ready((y, new_rm, new_rv))
    check(x, weight, bias, running_mean, running_var, y, new_rm, new_rv, 1e-4)

    # --- ragged-C case (C not a multiple of 128) handled fully in-kernel, no pad/slice --------
    N3, C3 = 16, 200
    x3 = jax.random.normal(k1, (N3, C3), dtype=jnp.float32)
    w3 = 1.0 + 0.1 * jax.random.normal(k2, (C3,), dtype=jnp.float32)
    b3 = 0.1 * jax.random.normal(k3, (C3,), dtype=jnp.float32)
    rm3 = jnp.zeros((C3,), jnp.float32)
    rv3 = jnp.ones((C3,), jnp.float32)
    y3, nrm3, nrv3 = batchnorm1d_train(x3, w3, b3, rm3, rv3)
    jax.block_until_ready((y3, nrm3, nrv3))
    check(x3, w3, b3, rm3, rv3, y3, nrm3, nrv3, 1e-4)

    # --- large-N / tiled-reduction path, forced with a tiny VMEM budget (ragged N and C) ------
    N4, C4 = 20, 600
    x4 = jax.random.normal(k2, (N4, C4), dtype=jnp.float32)
    w4 = jnp.ones((C4,), jnp.float32)
    b4 = jnp.zeros((C4,), jnp.float32)
    rm4 = jnp.zeros((C4,), jnp.float32)
    rv4 = jnp.ones((C4,), jnp.float32)
    y4, nrm4, nrv4 = batchnorm1d_train(x4, w4, b4, rm4, rv4, vmem_budget_bytes=50_000)
    jax.block_until_ready((y4, nrm4, nrv4))
    check(x4, w4, b4, rm4, rv4, y4, nrm4, nrv4, 1e-3)

    print("KERNEL_OK")
</pallas_src>

<mosaic_0001>
module attributes {stable_mosaic.version = 11 : i64} {
  func.func @_bn1d_fused_kernel(%arg0: i32, %arg1: memref<8x32xf32, #tpu.memory_space<vmem>>, %arg2: memref<4x32xf32, #tpu.memory_space<vmem>>, %arg3: memref<8x32xf32, #tpu.memory_space<vmem>>, %arg4: memref<2x32xf32, #tpu.memory_space<vmem>>) attributes {dimension_semantics = [#tpu.dimension_semantics<parallel>], iteration_bounds = array<i64: 1>, scalar_prefetch = 0 : i64, scratch_operands = 0 : i64, tpu.core_type = #tpu.core_type<tc>, window_params = [{transform_indices = @transform_0, window_bounds = array<i64: 8, 32>}, {transform_indices = @transform_1, window_bounds = array<i64: 4, 32>}, {transform_indices = @transform_2, window_bounds = array<i64: 8, 32>}, {transform_indices = @transform_3, window_bounds = array<i64: 2, 32>}]} {
    %c0 = arith.constant 0 : index
    %c0_0 = arith.constant 0 : index
    %0 = vector.load %arg1[%c0, %c0_0] : memref<8x32xf32, #tpu.memory_space<vmem>>, vector<8x32xf32>
    %cst = arith.constant dense<0.000000e+00> : vector<32xf32>
    %1 = vector.multi_reduction <add>, %0, %cst [0] : vector<8x32xf32> to vector<32xf32>
    %2 = vector.shape_cast %1 : vector<32xf32> to vector<1x32xf32>
    %cst_1 = arith.constant 1.250000e-01 : f32
    %3 = vector.broadcast %cst_1 : f32 to vector<1x32xf32>
    %4 = arith.mulf %2, %3 : vector<1x32xf32>
    %5 = vector.broadcast %4 : vector<1x32xf32> to vector<8x32xf32>
    %6 = arith.subf %0, %5 : vector<8x32xf32>
    %7 = arith.mulf %6, %6 : vector<8x32xf32>
    %cst_2 = arith.constant dense<0.000000e+00> : vector<32xf32>
    %8 = vector.multi_reduction <add>, %7, %cst_2 [0] : vector<8x32xf32> to vector<32xf32>
    %9 = vector.shape_cast %8 : vector<32xf32> to vector<1x32xf32>
    %cst_3 = arith.constant 0.142857149 : f32
    %10 = vector.broadcast %cst_3 : f32 to vector<1x32xf32>
    %11 = arith.mulf %9, %10 : vector<1x32xf32>
    %c0_4 = arith.constant 0 : index
    %c0_5 = arith.constant 0 : index
    %12 = vector.load %arg2[%c0_4, %c0_5] : memref<4x32xf32, #tpu.memory_space<vmem>>, vector<4x32xf32>
    %13 = vector.extract_strided_slice %12 {offsets = [0, 0], sizes = [1, 32], strides = [1, 1]} : vector<4x32xf32> to vector<1x32xf32>
    %14 = vector.extract_strided_slice %12 {offsets = [1, 0], sizes = [1, 32], strides = [1, 1]} : vector<4x32xf32> to vector<1x32xf32>
    %15 = vector.extract_strided_slice %12 {offsets = [2, 0], sizes = [1, 32], strides = [1, 1]} : vector<4x32xf32> to vector<1x32xf32>
    %16 = vector.extract_strided_slice %12 {offsets = [3, 0], sizes = [1, 32], strides = [1, 1]} : vector<4x32xf32> to vector<1x32xf32>
    %cst_6 = arith.constant 9.99999974E-6 : f32
    %17 = vector.broadcast %cst_6 : f32 to vector<1x32xf32>
    %18 = arith.addf %11, %17 : vector<1x32xf32>
    %19 = math.rsqrt %18 : vector<1x32xf32>
    %20 = arith.mulf %13, %19 : vector<1x32xf32>
    %21 = arith.mulf %4, %20 : vector<1x32xf32>
    %22 = arith.subf %14, %21 : vector<1x32xf32>
    %23 = vector.broadcast %20 : vector<1x32xf32> to vector<8x32xf32>
    %24 = arith.mulf %0, %23 : vector<8x32xf32>
    %25 = vector.broadcast %22 : vector<1x32xf32> to vector<8x32xf32>
    %26 = arith.addf %24, %25 : vector<8x32xf32>
    %c0_7 = arith.constant 0 : index
    %c0_8 = arith.constant 0 : index
    %27 = vector.load %arg3[%c0_7, %c0_8] : memref<8x32xf32, #tpu.memory_space<vmem>>, vector<8x32xf32>
    tpu.vector_store %arg3[%c0_7, %c0_8], %26 {strides = array<i32>} : memref<8x32xf32, #tpu.memory_space<vmem>>, vector<8x32xf32>,
    %cst_9 = arith.constant 0.899999976 : f32
    %28 = vector.broadcast %cst_9 : f32 to vector<1x32xf32>
    %29 = arith.mulf %15, %28 : vector<1x32xf32>
    %cst_10 = arith.constant 1.000000e-01 : f32
    %30 = vector.broadcast %cst_10 : f32 to vector<1x32xf32>
    %31 = arith.mulf %4, %30 : vector<1x32xf32>
    %32 = arith.addf %29, %31 : vector<1x32xf32>
    %c0_11 = arith.constant 0 : index
    %c0_12 = arith.constant 0 : index
    %33 = vector.load %arg4[%c0_11, %c0_12] : memref<2x32xf32, #tpu.memory_space<vmem>>, vector<1x32xf32>
    tpu.vector_store %arg4[%c0_11, %c0_12], %32 {strides = array<i32>} : memref<2x32xf32, #tpu.memory_space<vmem>>, vector<1x32xf32>,
    %cst_13 = arith.constant 0.899999976 : f32
    %34 = vector.broadcast %cst_13 : f32 to vector<1x32xf32>
    %35 = arith.mulf %16, %34 : vector<1x32xf32>
    %cst_14 = arith.constant 1.000000e-01 : f32
    %36 = vector.broadcast %cst_14 : f32 to vector<1x32xf32>
    %37 = arith.mulf %11, %36 : vector<1x32xf32>
    %38 = arith.addf %35, %37 : vector<1x32xf32>
    %c1 = arith.constant 1 : index
    %c0_15 = arith.constant 0 : index
    %39 = vector.load %arg4[%c1, %c0_15] : memref<2x32xf32, #tpu.memory_space<vmem>>, vector<1x32xf32>
    tpu.vector_store %arg4[%c1, %c0_15], %38 {strides = array<i32>} : memref<2x32xf32, #tpu.memory_space<vmem>>, vector<1x32xf32>,
    return
  }
  func.func @transform_0(%arg0: i32) -> (i32, i32) {
    %c0_i32 = arith.constant 0 : i32
    %c0_i32_0 = arith.constant 0 : i32
    return %c0_i32, %arg0 : i32, i32
  }
  func.func @transform_1(%arg0: i32) -> (i32, i32) {
    %c0_i32 = arith.constant 0 : i32
    %c0_i32_0 = arith.constant 0 : i32
    return %c0_i32, %arg0 : i32, i32
  }
  func.func @transform_2(%arg0: i32) -> (i32, i32) {
    %c0_i32 = arith.constant 0 : i32
    %c0_i32_0 = arith.constant 0 : i32
    return %c0_i32, %arg0 : i32, i32
  }
  func.func @transform_3(%arg0: i32) -> (i32, i32) {
    %c0_i32 = arith.constant 0 : i32
    %c0_i32_0 = arith.constant 0 : i32
    return %c0_i32, %arg0 : i32, i32
  }
}

</mosaic_0001>

<bundles_post_ra>
// kernel: tpu_custom_call.1
= control target key start
LH: loop header
LB: loop body
LE: loop exit
PB: predicated region body
PF: predicated region fallthrough
CT: control target
= control target key end

     0   :  { %9 = vsyncpa [#allocation3], 0  ;;  %s295_s0 = inlined_call_operand.hbm [shape: f32[8,32], index: 0, kind: input, shape index: {}]   ;;  %s296_s1 = inlined_call_operand.hbm [shape: f32[4,32], index: 1, kind: input, shape index: {}]   ;;  %s297_s2 = inlined_call_operand.hbm [shape: f32[8,32], index: 2, kind: output, shape index: {0}]   ;;  %s298_s3 = inlined_call_operand.hbm [shape: f32[2,32], index: 3, kind: output, shape index: {1}]  }
   0x1   :  { %10 = vsyncpa [#allocation6], 0 }
   0x2   :  { %11 = vsyncpa [#allocation4], 0 }
   0x3   :  { %12 = vsyncpa [#allocation9], 0  ;;  %s220_s12 = smov [#allocation2]   ;;  %s221_s14 = smov [#allocation5]  }
   0x4   :  { %s19_s13 = sshll.u32 %s220_s12, 4  ;;  %s29_s15 = sshll.u32 %s221_s14, 4  ;;  %s20_s13 = int_to_ptr.vmem [resolvable:$true] %s19_s13  ;;  %s30_s15 = int_to_ptr.vmem [resolvable:$true] %s29_s15 }
   0x5   :  { %s124_s18 = scalar_lea.hbm %s295_s0, 128 }
   0x6   :  { %p125_p0 = scmp.ne.s32.totalorder %s295_s0, %s124_s18  ;;  %p128_p1 = scmp.lt.u32.totalorder %s124_s18, %s295_s0 }
   0x8   :  { %p130_p2 = pnand %p128_p1, %p125_p0 }
   0xa   :  { %133 = shalt.err (!%p130_p2)
}
   0xb   :  { %s134_s23 = scalar_lea.vmem %s20_s13, 128  ;;  %p139_p4 = scmp.lt.s32.totalorder %s20_s13, %s20_s13 }
   0xc   :  { %p135_p3 = scmp.ne.s32.totalorder %s20_s13, %s134_s23  ;;  %p140_p5 = scmp.lt.s32.totalorder %s134_s23, %s134_s23 }
   0xe   :  { %p141_p6 = por %p140_p5, %p139_p4 }
  0x10   :  { %p142_p7 = pnand %p141_p6, %p135_p3 }
  0x12   :  { %145 = shalt.err (!%p142_p7)
}
  0x13   :  { %22 = dma.hbm_to_vmem [thread:$0]  %s295_s0, 128, %s20_s13, [#allocation3]  }
  0x14   :  { %s146_s28 = scalar_lea.hbm %s296_s1, 64 }
  0x15   :  { %p147_p8 = scmp.ne.s32.totalorder %s296_s1, %s146_s28  ;;  %p150_p9 = scmp.lt.u32.totalorder %s146_s28, %s296_s1 }
  0x17   :  { %p152_p10 = pnand %p150_p9, %p147_p8 }
  0x19   :  { %155 = shalt.err (!%p152_p10)
}
  0x1a   :  { %s156_s6 = scalar_lea.vmem %s30_s15, 64  ;;  %p161_p12 = scmp.lt.s32.totalorder %s30_s15, %s30_s15 }
  0x1b   :  { %p157_p11 = scmp.ne.s32.totalorder %s30_s15, %s156_s6  ;;  %p162_p13 = scmp.lt.s32.totalorder %s156_s6, %s156_s6 }
  0x1d   :  { %p163_p0 = por %p162_p13, %p161_p12 }
  0x1f   :  { %p164_p1 = pnand %p163_p0, %p157_p11 }
  0x21   :  { %167 = shalt.err (!%p164_p1)
}
  0x22   :  { %32 = dma.hbm_to_vmem [thread:$0]  %s296_s1, 64, %s30_s15, [#allocation6]  }
  0x23   :  { %212 = dma.done.wait [#allocation3], 128  }
  0x24   :  { %213 = vsyncadd [#allocation3], 4294967168 }
  0x25   :  { %214 = dma.done.wait [#allocation6], 64  }
  0x26   :  { %215 = vsyncadd [#allocation6], 4294967232  ;;  %vm40_vm0 = vcmask 261120   ;;  %v39_v0 = vld [vmem:[#allocation2] sm:$0xff]  ;;  %v59_v8 = vld [vmem:[#allocation5] sm:$0xf]  ;;  %v68_v26 = vlaneseq }
  0x27   :  { %v41_v1 = vsel %vm40_vm0, %v39_v0, 0.0  ;;  %v79_v10 = vmul.f32 0.9, %v59_v8  ;;  %vm82_vm1 = vcmask 256002   ;;  %s222_s1 = smov [#allocation8]   ;;  %vm86_vm2 = vcmask 257027  }
  0x28   :  { %v42_v2 = vrot.slane %v41_v1, 4  ;;  %s104_s8 = sshll.u32 %s222_s1, 4  ;;  %s105_s8 = int_to_ptr.vmem [resolvable:$true] %s104_s8 }
  0x29   :  { %s168_s9 = scalar_lea.vmem %s105_s8, 32  ;;  %p173_p3 = scmp.lt.s32.totalorder %s105_s8, %s105_s8 }
  0x2a   :  { %v43_v3 = vadd.f32 %v42_v2, %v41_v1  ;;  %p169_p2 = scmp.ne.s32.totalorder %s105_s8, %s168_s9  ;;  %p174_p4 = scmp.lt.s32.totalorder %s168_s9, %s168_s9 }
  0x2c   :  { %v44_v4 = vrot.slane %v43_v3, 2  ;;  %p175_p5 = por %p174_p4, %p173_p3 }
  0x2e   :  { %v45_v5 = vadd.f32 %v44_v4, %v43_v3  ;;  %p176_p6 = pnand %p175_p5, %p169_p2 }
  0x30   :  { %v46_v6 = vrot.slane %v45_v5, 1 }
  0x32   :  { %v47_v7 = vadd.f32 %v46_v6, %v45_v5 }
  0x34   :  { %v48_v9 = vmul.f32 0.125, %v47_v7 }
  0x36   :  { %v49_v11 = vsub.f32 %v39_v0, %v48_v9  ;;  %v80_v12 = vmul.f32 0.1, %v48_v9 }
  0x38   :  { %v50_v13 = vmul.f32 %v49_v11, %v49_v11  ;;  %v81_v14 = vadd.f32 %v80_v12, %v79_v10 }
  0x3a   :  { %v51_v15 = vsel %vm40_vm0, %v50_v13, 0.0  ;;  %83 = vst.msk [vmem:[#allocation8 - $0x2] sm:$0x4] %vm82_vm1, %v81_v14 }
  0x3b   :  { %v52_v16 = vrot.slane %v51_v15, 4 }
  0x3d   :  { %v53_v17 = vadd.f32 %v52_v16, %v51_v15 }
  0x3f   :  { %v54_v18 = vrot.slane %v53_v17, 2 }
  0x41   :  { %v55_v19 = vadd.f32 %v54_v18, %v53_v17 }
  0x43   :  { %v56_v20 = vrot.slane %v55_v19, 1 }
  0x45   :  { %v57_v21 = vadd.f32 %v56_v20, %v55_v19 }
  0x47   :  { %v58_v22 = vmul.f32 0.14285715, %v57_v21 }
  0x49   :  { %v60_v23 = vadd.f32 1e-05, %v58_v22  ;;  %v84_v24 = vmul.f32 0.1, %v58_v22 }
  0x4b   :  { %122 = vrsqrt.f32 %v60_v23  ;;  %v85_v25 = vadd.f32 %v84_v24, %v79_v10 }
  0x4d   :  { %87 = vst.msk [vmem:[#allocation8 - $0x2] sm:$0x8] %vm86_vm2, %v85_v25 }
  0x4e   :  { %179 = shalt.err (!%p176_p6)
}
  0x4f   :  { %s180_s12 = scalar_lea.hbm %s298_s3, 32 }
  0x50   :  { %p181_p7 = scmp.ne.s32.totalorder %s298_s3, %s180_s12  ;;  %p184_p8 = scmp.lt.u32.totalorder %s180_s12, %s298_s3 }
  0x52   :  { %p186_p9 = pnand %p184_p8, %p181_p7 }
  0x54   :  { %189 = shalt.err (!%p186_p9)
}
  0x55   :  { %107 = dma.vmem_to_hbm [thread:$0]  %s105_s8, 32, %s298_s3, [#allocation9]   ;;  %v69_v27 = vshrl.u32 %v68_v26, 7  ;;  %v123_v29 = vpop.eup %122 }
  0x56   :  { %v62_v30 = vmul.f32 %v123_v29, %v59_v8  ;;  %s223_s19 = smov [#allocation7]  }
  0x57   :  { %v70_v28 = vsub.s32 0, %v69_v27  ;;  %v75_v34 = vsub.s32 1, %v69_v27  ;;  %s94_s20 = sshll.u32 %s223_s19, 4  ;;  %s95_s20 = int_to_ptr.vmem [resolvable:$true] %s94_s20 }
  0x58   :  { %v63_v31 = vmul.f32 %v62_v30, %v48_v9  ;;  %s190_s21 = scalar_lea.vmem %s95_s20, 128  ;;  %p195_p11 = scmp.lt.s32.totalorder %s95_s20, %s95_s20 }
  0x59   :  { %v71_v32 = vrot.slane %v62_v30, %v70_v28  ;;  %p191_p10 = scmp.ne.s32.totalorder %s95_s20, %s190_s21  ;;  %p196_p12 = scmp.lt.s32.totalorder %s190_s21, %s190_s21 }
  0x5a   :  { %v65_v33 = vrot.slane %v63_v31, 7 }
  0x5b   :  { %v72_v36 = vmul.f32 %v71_v32, %v39_v0  ;;  %p197_p13 = por %p196_p12, %p195_p11 }
  0x5c   :  { %v67_v35 = vsub.f32 %v59_v8, %v65_v33 }
  0x5d   :  { %p198_p0 = pnand %p197_p13, %p191_p10 }
  0x5e   :  { %v76_v37 = vrot.slane %v67_v35, %v75_v34 }
  0x60   :  { %v77_v38 = vadd.f32 %v76_v37, %v72_v36 }
  0x62   :  { %78 = vst.msk [vmem:[#allocation7] sm:$0xff] %vm40_vm0, %v77_v38 }
  0x63   :  { %201 = shalt.err (!%p198_p0)
}
  0x64   :  { %s202_s23 = scalar_lea.hbm %s297_s2, 128 }
  0x65   :  { %p203_p1 = scmp.ne.s32.totalorder %s297_s2, %s202_s23  ;;  %p206_p2 = scmp.lt.u32.totalorder %s202_s23, %s297_s2 }
  0x67   :  { %p208_p3 = pnand %p206_p2, %p203_p1 }
  0x69   :  { %211 = shalt.err (!%p208_p3)
}
  0x6a   :  { %97 = dma.vmem_to_hbm [thread:$0]  %s95_s20, 128, %s297_s2, [#allocation4]  }
  0x6b   :  { %216 = dma.done.wait [#allocation4], 128  }
  0x6c   :  { %217 = vsyncadd [#allocation4], 4294967168 }
  0x6d   :  { %218 = dma.done.wait [#allocation9], 32  }
  0x6e   :  { %219 = vsyncadd [#allocation9], 4294967264 }
  0x6f   :  { %114 = vsyncpa [#allocation3], 1 }
  0x70   :  { %115 = vsyncpa [#allocation6], 1 }
  0x71   :  { %116 = vsyncpa [#allocation4], 1 }
  0x72   :  { %117 = vsyncpa [#allocation9], 1 }

</bundles_post_ra>
